<compile_context>
chip_gen: v7x
topology: tpu7x:2x2x1
jax: 0.10.0
libtpu: 0.0.40
codegen_flags: <defaults>
</compile_context>

<pallas_src>
import functools

import numpy as np

import jax
import jax.numpy as jnp
from jax.experimental import pallas as pl
from jax.experimental.pallas import tpu as pltpu


# ---------------------------------------------------------------------------
# Fused Pallas kernel
# ---------------------------------------------------------------------------
def _temporal_block_kernel(*refs, n_taps, dil_lanes, pad_lanes, pad_alloc,
                           has_downsample):
    """conv1 -> relu -> conv2 -> relu -> (+ residual / 1x1 downsample) -> relu.

    Ref order: inputs (x, pos, w1, b1, w2, b2[, wd, bd]), output (o),
               scratch (xp, hp).
    x   : (C_in,  L)        activations, L = batch_tile * window * n_multiv lanes
    pos : (1, L)            lane position within its (batch) segment, float32
    w*  : (K, C_out, C_in*) packed conv taps;  b*: (C_out, 1)
    o   : (C_out, L)
    xp  : (C_in,  PA + L)   VMEM scratch, causally front-padded input
    hp  : (C_out, PA + L)   VMEM scratch, causally front-padded conv1 output
    PA = pad_lanes rounded up to a multiple of 128 (aligned payload copies).
    """
    if has_downsample:
        (x_ref, pos_ref, w1_ref, b1_ref, w2_ref, b2_ref, wd_ref, bd_ref,
         o_ref, xp_ref, hp_ref) = refs
    else:
        (x_ref, pos_ref, w1_ref, b1_ref, w2_ref, b2_ref,
         o_ref, xp_ref, hp_ref) = refs

    c_in, L = x_ref.shape
    c_out = o_ref.shape[0]
    PA = pad_alloc
    base = PA - pad_lanes          # where the "virtual" causal padding begins

    # Per-tap causal masks ({0,1}, zero lanes that would cross a batch boundary).
    # Computed once per grid step from the position row and shared by both convs.
    pos = pos_ref[...]                                  # (1, L) float32
    masks = []
    for k in range(n_taps):
        shift = pad_lanes - k * dil_lanes               # static lane shift of tap k
        masks.append((pos >= float(shift)).astype(jnp.float32) if shift > 0 else None)

    # Stage the causally front-padded input in VMEM. The zero-fill of the pad region
    # and the payload copy are both lane-aligned stores.
    if PA > 0:
        xp_ref[:, 0:PA] = jnp.zeros((c_in, PA), jnp.float32)
    xp_ref[:, PA:PA + L] = x_ref[...]

    def dilated_causal_conv(src_ref, w_ref, b_ref):
        """Causal dilated conv over time + bias + ReLU on the flat-lane layout."""
        co = w_ref.shape[1]
        acc = jnp.zeros((co, L), jnp.float32)
        for k in range(n_taps):                         # static unroll over taps
            off = base + k * dil_lanes                  # static lane offset
            xs = src_ref[:, off:off + L]                # time-shifted view (C, L)
            if masks[k] is not None:                    # nonzero causal shift:
                xs = xs * masks[k]                      # zero lanes from prev batch
            acc = acc + jax.lax.dot_general(
                w_ref[k], xs, (((1,), (0,)), ((), ())),
                preferred_element_type=jnp.float32)
        return jnp.maximum(acc + b_ref[...], 0.0)

    # conv1 + chomp + relu  (h never leaves VMEM)
    h = dilated_causal_conv(xp_ref, w1_ref, b1_ref)     # (C_out, L)

    if PA > 0:
        hp_ref[:, 0:PA] = jnp.zeros((c_out, PA), jnp.float32)
    hp_ref[:, PA:PA + L] = h

    # conv2 + chomp + relu
    h = dilated_causal_conv(hp_ref, w2_ref, b2_ref)     # (C_out, L)

    # residual (+ optional 1x1 conv downsample) + final relu, fused epilogue
    if has_downsample:
        res = jax.lax.dot_general(
            wd_ref[...], x_ref[...], (((1,), (0,)), ((), ())),
            preferred_element_type=jnp.float32) + bd_ref[...]
    else:
        res = x_ref[...]
    o_ref[...] = jnp.maximum(h + res, 0.0)


# ---------------------------------------------------------------------------
# Wrapper
# ---------------------------------------------------------------------------
def _pick_batch_tile(batch, wm):
    """Largest divisor of `batch` keeping ~8K lanes per grid step (lane-dense)."""
    max_bt = max(1, 8192 // wm)
    for bt in range(min(batch, max_bt), 0, -1):
        if batch % bt == 0 and (bt * wm) % 128 == 0:
            return bt
    return batch          # single tile == full array: no lane-divisibility needed


def temporal_block_forward(x, packed, *, n_inputs, n_outputs, window, n_multiv,
                           kernel_size, dilation, padding, stride=1):
    assert stride == 1, "TemporalBlock implemented for stride=1 (standard TCN usage)"
    assert padding >= (kernel_size - 1) * dilation

    x4 = x.reshape(-1, n_inputs, window, n_multiv).astype(jnp.float32)
    B = x4.shape[0]
    wm = window * n_multiv
    bt = _pick_batch_tile(B, wm)
    num_tiles = B // bt
    L = bt * wm                                    # lanes per grid step
    P = padding * n_multiv                         # causal front-pad, in lanes
    PA = ((P + 127) // 128) * 128 if P > 0 else 0  # pad region rounded to 128 lanes
    K = kernel_size
    has_ds = "wd" in packed

    # (B, C, W, M) -> (C, B*W*M): channel-major so the channel contraction is a plain
    # 2-D MXU matmul and the lane axis (batch, time, multiv) is wide / lane-dense.
    x2d = jnp.transpose(x4, (1, 0, 2, 3)).reshape(n_inputs, B * wm)

    # Lane position within its batch segment (constant); masks derive from it in-kernel.
    pos = (np.arange(B * wm, dtype=np.int64) % wm).astype(np.float32).reshape(1, B * wm)

    kern = functools.partial(
        _temporal_block_kernel, n_taps=K, dil_lanes=dilation * n_multiv,
        pad_lanes=P, pad_alloc=PA, has_downsample=has_ds)

    in_specs = [
        pl.BlockSpec((n_inputs, L), lambda i: (0, i)),                  # x
        pl.BlockSpec((1, L), lambda i: (0, i)),                         # pos
        pl.BlockSpec((K, n_outputs, n_inputs), lambda i: (0, 0, 0)),    # w1
        pl.BlockSpec((n_outputs, 1), lambda i: (0, 0)),                 # b1
        pl.BlockSpec((K, n_outputs, n_outputs), lambda i: (0, 0, 0)),   # w2
        pl.BlockSpec((n_outputs, 1), lambda i: (0, 0)),                 # b2
    ]
    args = [x2d, pos, packed["w1"], packed["b1"], packed["w2"], packed["b2"]]
    if has_ds:
        in_specs += [pl.BlockSpec((n_outputs, n_inputs), lambda i: (0, 0)),
                     pl.BlockSpec((n_outputs, 1), lambda i: (0, 0))]
        args += [packed["wd"], packed["bd"]]

    out2d = pl.pallas_call(
        kern,
        out_shape=jax.ShapeDtypeStruct((n_outputs, B * wm), jnp.float32),
        grid=(num_tiles,),
        in_specs=in_specs,
        out_specs=pl.BlockSpec((n_outputs, L), lambda i: (0, i)),
        scratch_shapes=[pltpu.VMEM((n_inputs, PA + L), jnp.float32),
                        pltpu.VMEM((n_outputs, PA + L), jnp.float32)],
        compiler_params=pltpu.CompilerParams(
            dimension_semantics=("parallel",)),
    )(*args)

    return jnp.transpose(out2d.reshape(n_outputs, B, window, n_multiv), (1, 0, 2, 3))


# ---------------------------------------------------------------------------
# Parameter setup (deterministic, synthetic) + one-time packing
# ---------------------------------------------------------------------------
def _weight_norm(v, g):
    # PyTorch weight_norm, dim=0: w = g * v / ||v|| (norm over all dims except 0)
    norm = jnp.sqrt(jnp.sum(v ** 2, axis=tuple(range(1, v.ndim)), keepdims=True))
    return g * v / norm


def init_temporal_block_params(key, n_inputs, n_outputs, kernel_size):
    ks = jax.random.split(key, 6)
    v1 = 0.01 * jax.random.normal(ks[0], (n_outputs, n_inputs, kernel_size, 1), jnp.float32)
    g1 = jnp.sqrt(jnp.sum(v1 ** 2, axis=(1, 2, 3), keepdims=True))  # weight_norm init: g = ||v||
    b1 = 0.1 * jax.random.normal(ks[1], (n_outputs,), jnp.float32)
    v2 = 0.01 * jax.random.normal(ks[2], (n_outputs, n_outputs, kernel_size, 1), jnp.float32)
    g2 = jnp.sqrt(jnp.sum(v2 ** 2, axis=(1, 2, 3), keepdims=True))
    b2 = 0.1 * jax.random.normal(ks[3], (n_outputs,), jnp.float32)
    params = {
        "w1": _weight_norm(v1, g1)[:, :, :, 0],   # (C_out, C_in, K)
        "b1": b1,
        "w2": _weight_norm(v2, g2)[:, :, :, 0],   # (C_out, C_out, K)
        "b2": b2,
    }
    if n_inputs != n_outputs:
        params["wd"] = 0.01 * jax.random.normal(ks[4], (n_outputs, n_inputs), jnp.float32)
        params["bd"] = 0.1 * jax.random.normal(ks[5], (n_outputs,), jnp.float32)
    return params


def pack_temporal_block_params(params):
    """One-time packing: tap-major conv weights, column biases."""
    packed = {
        "w1": jnp.transpose(params["w1"], (2, 0, 1)),   # (K, C_out, C_in)
        "b1": params["b1"].reshape(-1, 1),
        "w2": jnp.transpose(params["w2"], (2, 0, 1)),   # (K, C_out, C_out)
        "b2": params["b2"].reshape(-1, 1),
    }
    if "wd" in params:
        packed["wd"] = params["wd"]
        packed["bd"] = params["bd"].reshape(-1, 1)
    return packed


# ---------------------------------------------------------------------------
# Pure-JAX reference (for validation only)
# ---------------------------------------------------------------------------
def _ref_forward(x, params, *, n_inputs, window, n_multiv, dilation, padding):
    x = x.reshape(-1, n_inputs, window, n_multiv).astype(jnp.float32)

    def conv_chomp_relu(inp, w_oik, b):
        w = w_oik[:, :, :, None]   # OIHW with kernel width 1
        y = jax.lax.conv_general_dilated(
            inp, w, window_strides=(1, 1), padding=((padding, padding), (0, 0)),
            rhs_dilation=(dilation, 1),
            dimension_numbers=("NCHW", "OIHW", "NCHW"))
        y = y[:, :, : y.shape[2] - padding, :]      # Chomp1d
        return jnp.maximum(y + b[None, :, None, None], 0.0)

    h = conv_chomp_relu(x, params["w1"], params["b1"])
    h = conv_chomp_relu(h, params["w2"], params["b2"])
    if "wd" in params:
        res = jnp.einsum("oi,biwm->bowm", params["wd"], x) + params["bd"][None, :, None, None]
    else:
        res = x
    return jnp.maximum(h + res, 0.0)


if __name__ == "__main__":
    def run_case(n_inputs, n_outputs, batch, key):
        kernel_size = 3
        window, n_multiv = 16, 8
        dilation = 2
        padding = (kernel_size - 1) * dilation
        kx, kp = jax.random.split(key)
        x = jax.random.normal(kx, (batch, n_inputs, window, n_multiv), jnp.float32)
        params = init_temporal_block_params(kp, n_inputs, n_outputs, kernel_size)
        packed = pack_temporal_block_params(params)

        fwd = jax.jit(functools.partial(
            temporal_block_forward, n_inputs=n_inputs, n_outputs=n_outputs,
            window=window, n_multiv=n_multiv, kernel_size=kernel_size,
            dilation=dilation, padding=padding))
        out = jax.block_until_ready(fwd(x, packed))

        ref = _ref_forward(x, params, n_inputs=n_inputs, window=window,
                           n_multiv=n_multiv, dilation=dilation, padding=padding)
        assert out.shape == (batch, n_outputs, window, n_multiv)
        max_err = float(jnp.max(jnp.abs(out - ref)))
        assert jnp.allclose(out, ref, atol=5e-3, rtol=1e-2), max_err

    key = jax.random.PRNGKey(0)
    k1, k2 = jax.random.split(key)
    run_case(4, 8, 2, k1)   # downsample residual path (n_in != n_out)
    run_case(8, 8, 2, k2)   # identity residual path
    print("KERNEL_OK")
</pallas_src>

<mosaic_0001>
module attributes {stable_mosaic.version = 11 : i64} {
  func.func @_temporal_block_kernel(%arg0: i32, %arg1: memref<4x256xf32, #tpu.memory_space<vmem>>, %arg2: memref<1x256xf32, #tpu.memory_space<vmem>>, %arg3: memref<3x8x4xf32, #tpu.memory_space<vmem>>, %arg4: memref<8x1xf32, #tpu.memory_space<vmem>>, %arg5: memref<3x8x8xf32, #tpu.memory_space<vmem>>, %arg6: memref<8x1xf32, #tpu.memory_space<vmem>>, %arg7: memref<8x4xf32, #tpu.memory_space<vmem>>, %arg8: memref<8x1xf32, #tpu.memory_space<vmem>>, %arg9: memref<8x256xf32, #tpu.memory_space<vmem>>, %arg10: memref<4x384xf32, #tpu.memory_space<vmem>>, %arg11: memref<8x384xf32, #tpu.memory_space<vmem>>) attributes {dimension_semantics = [#tpu.dimension_semantics<parallel>], iteration_bounds = array<i64: 1>, scalar_prefetch = 0 : i64, scratch_operands = 2 : i64, tpu.core_type = #tpu.core_type<tc>, window_params = [{transform_indices = @transform_0, window_bounds = array<i64: 4, 256>}, {transform_indices = @transform_1, window_bounds = array<i64: 1, 256>}, {pipeline_mode = #tpu.pipeline_mode<synchronous>, transform_indices = @transform_2, window_bounds = array<i64: 3, 8, 4>}, {pipeline_mode = #tpu.pipeline_mode<synchronous>, transform_indices = @transform_3, window_bounds = array<i64: 8, 1>}, {pipeline_mode = #tpu.pipeline_mode<synchronous>, transform_indices = @transform_4, window_bounds = array<i64: 3, 8, 8>}, {pipeline_mode = #tpu.pipeline_mode<synchronous>, transform_indices = @transform_5, window_bounds = array<i64: 8, 1>}, {pipeline_mode = #tpu.pipeline_mode<synchronous>, transform_indices = @transform_6, window_bounds = array<i64: 8, 4>}, {pipeline_mode = #tpu.pipeline_mode<synchronous>, transform_indices = @transform_7, window_bounds = array<i64: 8, 1>}, {transform_indices = @transform_8, window_bounds = array<i64: 8, 256>}]} {
    %c0 = arith.constant 0 : index
    %c0_0 = arith.constant 0 : index
    %0 = vector.load %arg2[%c0, %c0_0] : memref<1x256xf32, #tpu.memory_space<vmem>>, vector<1x256xf32>
    %cst = arith.constant 3.200000e+01 : f32
    %1 = vector.broadcast %cst : f32 to vector<1x256xf32>
    %2 = arith.cmpf oge, %0, %1 : vector<1x256xf32>
    %3 = arith.extui %2 : vector<1x256xi1> to vector<1x256xi32>
    %4 = arith.sitofp %3 : vector<1x256xi32> to vector<1x256xf32>
    %cst_1 = arith.constant 1.600000e+01 : f32
    %5 = vector.broadcast %cst_1 : f32 to vector<1x256xf32>
    %6 = arith.cmpf oge, %0, %5 : vector<1x256xf32>
    %7 = arith.extui %6 : vector<1x256xi1> to vector<1x256xi32>
    %8 = arith.sitofp %7 : vector<1x256xi32> to vector<1x256xf32>
    %cst_2 = arith.constant 0.000000e+00 : f32
    %9 = vector.broadcast %cst_2 : f32 to vector<4x128xf32>
    %c0_3 = arith.constant 0 : index
    %c0_4 = arith.constant 0 : index
    %10 = vector.load %arg10[%c0_3, %c0_4] : memref<4x384xf32, #tpu.memory_space<vmem>>, vector<4x128xf32>
    tpu.vector_store %arg10[%c0_3, %c0_4], %9 {strides = array<i32>} : memref<4x384xf32, #tpu.memory_space<vmem>>, vector<4x128xf32>,
    %c0_5 = arith.constant 0 : index
    %c0_6 = arith.constant 0 : index
    %11 = vector.load %arg1[%c0_5, %c0_6] : memref<4x256xf32, #tpu.memory_space<vmem>>, vector<4x256xf32>
    %c0_7 = arith.constant 0 : index
    %c128 = arith.constant 128 : index
    %12 = vector.load %arg10[%c0_7, %c128] : memref<4x384xf32, #tpu.memory_space<vmem>>, vector<4x256xf32>
    tpu.vector_store %arg10[%c0_7, %c128], %11 {strides = array<i32>} : memref<4x384xf32, #tpu.memory_space<vmem>>, vector<4x256xf32>,
    %cst_8 = arith.constant 0.000000e+00 : f32
    %13 = vector.broadcast %cst_8 : f32 to vector<8x256xf32>
    %c0_9 = arith.constant 0 : index
    %c96 = arith.constant 96 : index
    %14 = vector.load %arg10[%c0_9, %c96] : memref<4x384xf32, #tpu.memory_space<vmem>>, vector<4x256xf32>
    %15 = vector.broadcast %4 : vector<1x256xf32> to vector<4x256xf32>
    %16 = arith.mulf %14, %15 : vector<4x256xf32>
    %c0_10 = arith.constant 0 : index
    %c0_11 = arith.constant 0 : index
    %c0_12 = arith.constant 0 : index
    %17 = vector.load %arg3[%c0_10, %c0_11, %c0_12] : memref<3x8x4xf32, #tpu.memory_space<vmem>>, vector<1x8x4xf32>
    %18 = vector.shape_cast %17 : vector<1x8x4xf32> to vector<8x4xf32>
    %cst_13 = arith.constant dense<0.000000e+00> : vector<8x256xf32>
    %19 = tpu.matmul %18, %16, %cst_13 {dimension_numbers = #tpu.dot_dimension_numbers<[1], [0], [0], [1], [0, 0, 1, 1], [], []>} : vector<8x4xf32>, vector<4x256xf32>, vector<8x256xf32> -> vector<8x256xf32>
    %20 = arith.addf %13, %19 : vector<8x256xf32>
    %c0_14 = arith.constant 0 : index
    %c112 = arith.constant 112 : index
    %21 = vector.load %arg10[%c0_14, %c112] : memref<4x384xf32, #tpu.memory_space<vmem>>, vector<4x256xf32>
    %22 = vector.broadcast %8 : vector<1x256xf32> to vector<4x256xf32>
    %23 = arith.mulf %21, %22 : vector<4x256xf32>
    %c1 = arith.constant 1 : index
    %c0_15 = arith.constant 0 : index
    %c0_16 = arith.constant 0 : index
    %24 = vector.load %arg3[%c1, %c0_15, %c0_16] : memref<3x8x4xf32, #tpu.memory_space<vmem>>, vector<1x8x4xf32>
    %25 = vector.shape_cast %24 : vector<1x8x4xf32> to vector<8x4xf32>
    %cst_17 = arith.constant dense<0.000000e+00> : vector<8x256xf32>
    %26 = tpu.matmul %25, %23, %cst_17 {dimension_numbers = #tpu.dot_dimension_numbers<[1], [0], [0], [1], [0, 0, 1, 1], [], []>} : vector<8x4xf32>, vector<4x256xf32>, vector<8x256xf32> -> vector<8x256xf32>
    %27 = arith.addf %20, %26 : vector<8x256xf32>
    %c0_18 = arith.constant 0 : index
    %c128_19 = arith.constant 128 : index
    %28 = vector.load %arg10[%c0_18, %c128_19] : memref<4x384xf32, #tpu.memory_space<vmem>>, vector<4x256xf32>
    %c2 = arith.constant 2 : index
    %c0_20 = arith.constant 0 : index
    %c0_21 = arith.constant 0 : index
    %29 = vector.load %arg3[%c2, %c0_20, %c0_21] : memref<3x8x4xf32, #tpu.memory_space<vmem>>, vector<1x8x4xf32>
    %30 = vector.shape_cast %29 : vector<1x8x4xf32> to vector<8x4xf32>
    %cst_22 = arith.constant dense<0.000000e+00> : vector<8x256xf32>
    %31 = tpu.matmul %30, %28, %cst_22 {dimension_numbers = #tpu.dot_dimension_numbers<[1], [0], [0], [1], [0, 0, 1, 1], [], []>} : vector<8x4xf32>, vector<4x256xf32>, vector<8x256xf32> -> vector<8x256xf32>
    %32 = arith.addf %27, %31 : vector<8x256xf32>
    %c0_23 = arith.constant 0 : index
    %c0_24 = arith.constant 0 : index
    %33 = vector.load %arg4[%c0_23, %c0_24] : memref<8x1xf32, #tpu.memory_space<vmem>>, vector<8x1xf32>
    %34 = vector.broadcast %33 : vector<8x1xf32> to vector<8x256xf32>
    %35 = arith.addf %32, %34 : vector<8x256xf32>
    %cst_25 = arith.constant 0.000000e+00 : f32
    %36 = vector.broadcast %cst_25 : f32 to vector<8x256xf32>
    %37 = arith.maximumf %35, %36 : vector<8x256xf32>
    %cst_26 = arith.constant 0.000000e+00 : f32
    %38 = vector.broadcast %cst_26 : f32 to vector<8x128xf32>
    %c0_27 = arith.constant 0 : index
    %c0_28 = arith.constant 0 : index
    %39 = vector.load %arg11[%c0_27, %c0_28] : memref<8x384xf32, #tpu.memory_space<vmem>>, vector<8x128xf32>
    tpu.vector_store %arg11[%c0_27, %c0_28], %38 {strides = array<i32>} : memref<8x384xf32, #tpu.memory_space<vmem>>, vector<8x128xf32>,
    %c0_29 = arith.constant 0 : index
    %c128_30 = arith.constant 128 : index
    %40 = vector.load %arg11[%c0_29, %c128_30] : memref<8x384xf32, #tpu.memory_space<vmem>>, vector<8x256xf32>
    tpu.vector_store %arg11[%c0_29, %c128_30], %37 {strides = array<i32>} : memref<8x384xf32, #tpu.memory_space<vmem>>, vector<8x256xf32>,
    %cst_31 = arith.constant 0.000000e+00 : f32
    %41 = vector.broadcast %cst_31 : f32 to vector<8x256xf32>
    %c0_32 = arith.constant 0 : index
    %c96_33 = arith.constant 96 : index
    %42 = vector.load %arg11[%c0_32, %c96_33] : memref<8x384xf32, #tpu.memory_space<vmem>>, vector<8x256xf32>
    %43 = vector.broadcast %4 : vector<1x256xf32> to vector<8x256xf32>
    %44 = arith.mulf %42, %43 : vector<8x256xf32>
    %c0_34 = arith.constant 0 : index
    %c0_35 = arith.constant 0 : index
    %c0_36 = arith.constant 0 : index
    %45 = vector.load %arg5[%c0_34, %c0_35, %c0_36] : memref<3x8x8xf32, #tpu.memory_space<vmem>>, vector<1x8x8xf32>
    %46 = vector.shape_cast %45 : vector<1x8x8xf32> to vector<8x8xf32>
    %cst_37 = arith.constant dense<0.000000e+00> : vector<8x256xf32>
    %47 = tpu.matmul %46, %44, %cst_37 {dimension_numbers = #tpu.dot_dimension_numbers<[1], [0], [0], [1], [0, 0, 1, 1], [], []>} : vector<8x8xf32>, vector<8x256xf32>, vector<8x256xf32> -> vector<8x256xf32>
    %48 = arith.addf %41, %47 : vector<8x256xf32>
    %c0_38 = arith.constant 0 : index
    %c112_39 = arith.constant 112 : index
    %49 = vector.load %arg11[%c0_38, %c112_39] : memref<8x384xf32, #tpu.memory_space<vmem>>, vector<8x256xf32>
    %50 = vector.broadcast %8 : vector<1x256xf32> to vector<8x256xf32>
    %51 = arith.mulf %49, %50 : vector<8x256xf32>
    %c1_40 = arith.constant 1 : index
    %c0_41 = arith.constant 0 : index
    %c0_42 = arith.constant 0 : index
    %52 = vector.load %arg5[%c1_40, %c0_41, %c0_42] : memref<3x8x8xf32, #tpu.memory_space<vmem>>, vector<1x8x8xf32>
    %53 = vector.shape_cast %52 : vector<1x8x8xf32> to vector<8x8xf32>
    %cst_43 = arith.constant dense<0.000000e+00> : vector<8x256xf32>
    %54 = tpu.matmul %53, %51, %cst_43 {dimension_numbers = #tpu.dot_dimension_numbers<[1], [0], [0], [1], [0, 0, 1, 1], [], []>} : vector<8x8xf32>, vector<8x256xf32>, vector<8x256xf32> -> vector<8x256xf32>
    %55 = arith.addf %48, %54 : vector<8x256xf32>
    %c0_44 = arith.constant 0 : index
    %c128_45 = arith.constant 128 : index
    %56 = vector.load %arg11[%c0_44, %c128_45] : memref<8x384xf32, #tpu.memory_space<vmem>>, vector<8x256xf32>
    %c2_46 = arith.constant 2 : index
    %c0_47 = arith.constant 0 : index
    %c0_48 = arith.constant 0 : index
    %57 = vector.load %arg5[%c2_46, %c0_47, %c0_48] : memref<3x8x8xf32, #tpu.memory_space<vmem>>, vector<1x8x8xf32>
    %58 = vector.shape_cast %57 : vector<1x8x8xf32> to vector<8x8xf32>
    %cst_49 = arith.constant dense<0.000000e+00> : vector<8x256xf32>
    %59 = tpu.matmul %58, %56, %cst_49 {dimension_numbers = #tpu.dot_dimension_numbers<[1], [0], [0], [1], [0, 0, 1, 1], [], []>} : vector<8x8xf32>, vector<8x256xf32>, vector<8x256xf32> -> vector<8x256xf32>
    %60 = arith.addf %55, %59 : vector<8x256xf32>
    %c0_50 = arith.constant 0 : index
    %c0_51 = arith.constant 0 : index
    %61 = vector.load %arg6[%c0_50, %c0_51] : memref<8x1xf32, #tpu.memory_space<vmem>>, vector<8x1xf32>
    %62 = vector.broadcast %61 : vector<8x1xf32> to vector<8x256xf32>
    %63 = arith.addf %60, %62 : vector<8x256xf32>
    %cst_52 = arith.constant 0.000000e+00 : f32
    %64 = vector.broadcast %cst_52 : f32 to vector<8x256xf32>
    %65 = arith.maximumf %63, %64 : vector<8x256xf32>
    %c0_53 = arith.constant 0 : index
    %c0_54 = arith.constant 0 : index
    %66 = vector.load %arg7[%c0_53, %c0_54] : memref<8x4xf32, #tpu.memory_space<vmem>>, vector<8x4xf32>
    %c0_55 = arith.constant 0 : index
    %c0_56 = arith.constant 0 : index
    %67 = vector.load %arg1[%c0_55, %c0_56] : memref<4x256xf32, #tpu.memory_space<vmem>>, vector<4x256xf32>
    %cst_57 = arith.constant dense<0.000000e+00> : vector<8x256xf32>
    %68 = tpu.matmul %66, %67, %cst_57 {dimension_numbers = #tpu.dot_dimension_numbers<[1], [0], [0], [1], [0, 0, 1, 1], [], []>} : vector<8x4xf32>, vector<4x256xf32>, vector<8x256xf32> -> vector<8x256xf32>
    %c0_58 = arith.constant 0 : index
    %c0_59 = arith.constant 0 : index
    %69 = vector.load %arg8[%c0_58, %c0_59] : memref<8x1xf32, #tpu.memory_space<vmem>>, vector<8x1xf32>
    %70 = vector.broadcast %69 : vector<8x1xf32> to vector<8x256xf32>
    %71 = arith.addf %68, %70 : vector<8x256xf32>
    %72 = arith.addf %65, %71 : vector<8x256xf32>
    %cst_60 = arith.constant 0.000000e+00 : f32
    %73 = vector.broadcast %cst_60 : f32 to vector<8x256xf32>
    %74 = arith.maximumf %72, %73 : vector<8x256xf32>
    %c0_61 = arith.constant 0 : index
    %c0_62 = arith.constant 0 : index
    %75 = vector.load %arg9[%c0_61, %c0_62] : memref<8x256xf32, #tpu.memory_space<vmem>>, vector<8x256xf32>
    tpu.vector_store %arg9[%c0_61, %c0_62], %74 {strides = array<i32>} : memref<8x256xf32, #tpu.memory_space<vmem>>, vector<8x256xf32>,
    return
  }
  func.func @transform_0(%arg0: i32) -> (i32, i32) {
    %c0_i32 = arith.constant 0 : i32
    %c0_i32_0 = arith.constant 0 : i32
    return %c0_i32, %arg0 : i32, i32
  }
  func.func @transform_1(%arg0: i32) -> (i32, i32) {
    %c0_i32 = arith.constant 0 : i32
    %c0_i32_0 = arith.constant 0 : i32
    return %c0_i32, %arg0 : i32, i32
  }
  func.func @transform_2(%arg0: i32) -> (i32, i32, i32) {
    %c0_i32 = arith.constant 0 : i32
    %c0_i32_0 = arith.constant 0 : i32
    %c0_i32_1 = arith.constant 0 : i32
    %c0_i32_2 = arith.constant 0 : i32
    return %c0_i32, %c0_i32_0, %c0_i32_1 : i32, i32, i32
  }
  func.func @transform_3(%arg0: i32) -> (i32, i32) {
    %c0_i32 = arith.constant 0 : i32
    %c0_i32_0 = arith.constant 0 : i32
    %c0_i32_1 = arith.constant 0 : i32
    return %c0_i32, %c0_i32_0 : i32, i32
  }
  func.func @transform_4(%arg0: i32) -> (i32, i32, i32) {
    %c0_i32 = arith.constant 0 : i32
    %c0_i32_0 = arith.constant 0 : i32
    %c0_i32_1 = arith.constant 0 : i32
    %c0_i32_2 = arith.constant 0 : i32
    return %c0_i32, %c0_i32_0, %c0_i32_1 : i32, i32, i32
  }
  func.func @transform_5(%arg0: i32) -> (i32, i32) {
    %c0_i32 = arith.constant 0 : i32
    %c0_i32_0 = arith.constant 0 : i32
    %c0_i32_1 = arith.constant 0 : i32
    return %c0_i32, %c0_i32_0 : i32, i32
  }
  func.func @transform_6(%arg0: i32) -> (i32, i32) {
    %c0_i32 = arith.constant 0 : i32
    %c0_i32_0 = arith.constant 0 : i32
    %c0_i32_1 = arith.constant 0 : i32
    return %c0_i32, %c0_i32_0 : i32, i32
  }
  func.func @transform_7(%arg0: i32) -> (i32, i32) {
    %c0_i32 = arith.constant 0 : i32
    %c0_i32_0 = arith.constant 0 : i32
    %c0_i32_1 = arith.constant 0 : i32
    return %c0_i32, %c0_i32_0 : i32, i32
  }
  func.func @transform_8(%arg0: i32) -> (i32, i32) {
    %c0_i32 = arith.constant 0 : i32
    %c0_i32_0 = arith.constant 0 : i32
    return %c0_i32, %arg0 : i32, i32
  }
}

</mosaic_0001>

<bundles_post_ra>
// kernel: temporal_block_forward.1
= control target key start
LH: loop header
LB: loop body
LE: loop exit
PB: predicated region body
PF: predicated region fallthrough
CT: control target
= control target key end

     0   :  { %v42_v0 = vlaneseq  ;;  %v799_v2 = vmov 0.0   ;;  %vm74_vm2 = vcmask 916480   ;;  %vm54_vm3 = vcmask 785408   ;;  %s802_s9 = smov 16   ;;  %s803_s10 = smov 32   ;;  %s952_s1 = inlined_call_operand.vmem [shape: f32[1,256], index: 1, kind: input, shape index: {}]   ;;  %s953_s0 = inlined_call_operand.vmem [shape: f32[4,256], index: 0, kind: input, shape index: {}]   ;;  %s954_s3 = inlined_call_operand.vmem [shape: f32[8,1], index: 3, kind: input, shape index: {}]   ;;  %s955_s2 = inlined_call_operand.vmem [shape: f32[3,8,4], index: 2, kind: input, shape index: {}]   ;;  %s956_s5 = inlined_call_operand.vmem [shape: f32[8,1], index: 5, kind: input, shape index: {}]   ;;  %s957_s6 = inlined_call_operand.vmem [shape: f32[8,4], index: 6, kind: input, shape index: {}]   ;;  %s958_s7 = inlined_call_operand.vmem [shape: f32[8,1], index: 7, kind: input, shape index: {}]   ;;  %s959_s4 = inlined_call_operand.vmem [shape: f32[3,8,8], index: 4, kind: input, shape index: {}]   ;;  %s960_s8 = inlined_call_operand.vmem [shape: f32[8,256], index: 8, kind: output, shape index: {}]  }
   0x1   :  { %v29_v1 = vld [vmem:[%s952_s1] sm:$0x3]  ;;  %36 = vst [vmem:[#allocation2] sm:$0xf] %v799_v2  ;;  %167 = vmatprep.mubr.f32.mxu0 %v799_v2  ;;  %471 = vmatprep.mubr.f32.mxu1 %v799_v2  ;;  %s801_s1 = smov 96   ;;  %v804_v29 = vmov 0  }
   0x2   :  { %v857_v3 = vld [vmem:[%s953_s0] sm:$0xff]  ;;  %vm33_vm0 = vcmp.ge.f32.partialorder %v29_v1, 16.0  ;;  %v43_v4 = vshrl.u32 %v42_v0, 7  ;;  %vm30_vm1 = vcmp.ge.f32.partialorder %v29_v1, 32.0  ;;  %s800_s0 = smov 112   ;;  %786 = vset.pattern.permute.xlu0 %v804_v29  ;;  %797 = vset.pattern.permute.xlu1 %v804_v29  ;;  %vm91_vm4 = vcmask 130048  }
   0x3   :  { %38 = vst [vmem:[#allocation2 + $0x4] sm:$0xff] %v857_v3  ;;  %v752_v5 = vsel %vm33_vm0, 1.0, %v799_v2  ;;  %v751_v6 = vsel %vm30_vm1, 1.0, %v799_v2  ;;  %v349_v30 = vld [vmem:[%s954_s3] sm:$0xff]  ;;  %vm98_vm5 = vcmask 1043456   ;;  %v753_v37 = vld [vmem:[%s955_s2 + $0x8] sm:$0xff]  ;;  %v268_v42 = vcombine.high %v857_v3, %v857_v3 }
   0x4   :  { %v44_v7 = vsub.s32 0, %v43_v4  ;;  %v48_v8 = vsub.s32 1, %v43_v4  ;;  %vm94_vm6 = vcmask 31744   ;;  %vm183_vm7 = vcmask 261120   ;;  %v60_v45 = vld [vmem:[%s955_s2] sm:$0xff]  ;;  %v760_v46 = vld [vmem:[%s955_s2 + $0x10] sm:$0xff] }
   0x5   :  { %vm403_vm8 = vcmask 64512  }
   0x6   :  { %v65_v9 = vrot.slane %v752_v5, %v44_v7  ;;  %v69_v10 = vrot.slane %v752_v5, %v48_v8  ;;  %v45_v11 = vrot.slane %v751_v6, %v44_v7  ;;  %v49_v12 = vrot.slane %v751_v6, %v48_v8  ;;  %v643_v5 = vld [vmem:[%s956_s5] sm:$0xff] }
   0x7   :  { %v653_v6 = vld [vmem:[%s957_s6] sm:$0xff] }
   0x8   :  { %v70_v13 = vcombine.low %v65_v9, %v69_v10  ;;  %v50_v14 = vcombine.low %v45_v11, %v49_v12  ;;  %v787_v31 = vpack.i.bf16 %v69_v10, %v65_v9  ;;  %v792_v32 = vpack.i.bf16 %v49_v12, %v45_v11  ;;  %v655_v7 = vld [vmem:[%s958_s7] sm:$0xff]  ;;  %v764_v12 = vld [vmem:[%s959_s4 + $0x8] sm:$0xff] }
   0xa   :  { %71 = vrot.lane.b32.xlu0 %v70_v13, %s800_s0  ;;  %v39_v16 = vld [vmem:[#allocation2] sm:$0xff]  ;;  %v40_v22 = vld [vmem:[#allocation2 + $0x8] sm:$0xf] }
   0xe   :  { %51 = vrot.lane.b32.xlu0 %v50_v14, %s801_s1 }
  0x7c   :  { %v72_v15 = vpop.permute.xlu0 %71 }
  0x7d   :  { %v73_v17 = vrot.slane %v72_v15, 4 }
  0x7f   :  { %v75_v18 = vsel %vm74_vm2, %v73_v17, %v72_v15  ;;  %v79_v27 = vmul.f32 %v73_v17, %v40_v22 }
  0x80   :  { %v78_v19 = vmul.f32 %v75_v18, %v39_v16  ;;  %v52_v20 = vpop.permute.xlu0 %51 }
  0x81   :  { %v53_v21 = vrot.slane %v52_v20, 4 }
  0x82   :  { %85 = vrot.lane.b32.xlu0 %v78_v19, %s802_s9  ;;  %v84_v23 = vcombine.high %v78_v19, %v78_v19  ;;  %v376_v19 = vld [vmem:[%s959_s4] sm:$0xff] }
  0x83   :  { %v55_v24 = vsel %vm54_vm3, %v53_v21, %v52_v20  ;;  %v59_v25 = vmul.f32 %v53_v21, %v40_v22  ;;  %v767_v20 = vld [vmem:[%s959_s4 + $0x10] sm:$0xff] }
  0x84   :  { %v58_v26 = vmul.f32 %v55_v24, %v39_v16  ;;  %87 = vrot.lane.b32.xlu1 %v84_v23, %s802_s9 }
  0x86   :  { %181 = vrot.lane.b32.xlu0 %v59_v25, %s803_s10  ;;  %v176_v28 = vcombine.high %v58_v26, %v58_v26 }
  0x88   :  { %89 = vrot.lane.b32.xlu1 %v79_v27, %s802_s9 }
  0x8a   :  { %352 = vperm.xlu0 %786, %v349_v30  }
  0x8c   :  { %179 = vrot.lane.b32.xlu1 %v176_v28, %s803_s10 }
  0x90   :  { %177 = vrot.lane.b32.xlu1 %v58_v26, %s803_s10 }
  0x94   :  { %788 = vrot.lane.b32.xlu1 %v787_v31, %s800_s0 }
  0x98   :  { %793 = vrot.lane.b32.xlu1 %v792_v32, %s801_s1 }
  0xf4   :  { %v86_v34 = vpop.permute.xlu0 %85 }
  0xf6   :  { %v88_v33 = vpop.permute.xlu1 %87 }
  0xf7   :  { %v92_v38 = vsel %vm91_vm4, %v86_v34, %v88_v33 }
  0xf8   :  { %v182_v39 = vpop.permute.xlu0 %181 }
  0xfa   :  { %v90_v35 = vpop.permute.xlu1 %89 }
  0xfb   :  { %v93_v36 = vsel %vm91_vm4, %v88_v33, %v90_v35 }
  0xfc   :  { %754 = vmatprep.subr.msk.mxu0 %vm98_vm5, %v93_v36 }
  0xfd   :  { %755 = vmatpush1.msk.msra.mxu0 %vm98_vm5, %v92_v38 }
  0xfe   :  { %756 = vmatmul.mubr.msk.f32.vlgmr.msra.gmra.mrb[0].mxu0 %vm94_vm6, %v753_v37  ;;  %v180_v40 = vpop.permute.xlu1 %179 }
  0xff   :  { %v185_v41 = vsel %vm183_vm7, %v180_v40, %v182_v39  ;;  %257 = vmatprep.mubr.f32.mxu0 %v799_v2 }
 0x100   :  { %757 = vmatprep.subr.msk.mxu0 %vm98_vm5, %v185_v41 }
 0x102   :  { %v178_v43 = vpop.permute.xlu1 %177 }
 0x103   :  { %v184_v44 = vsel %vm183_vm7, %v178_v43, %v180_v40 }
 0x104   :  { %758 = vmatpush1.msk.msra.mxu0 %vm98_vm5, %v184_v44 }
 0x105   :  { %761 = vmatprep.subr.msk.mxu0 %vm98_vm5, %v268_v42 }
 0x106   :  { %759 = vmatmul.mubr.msk.f32.vlgmr.msra.gmra.mrb[0].mxu0 %vm94_vm6, %v60_v45  ;;  %v789_v47 = vpop.permute.xlu1 %788 }
 0x107   :  { %762 = vmatpush1.msk.msra.mxu0 %vm98_vm5, %v857_v3  ;;  %340 = vmatprep.mubr.f32.mxu0 %v799_v2  ;;  %v791_v48 = vunpack.i.h.bf16 %v789_v47  ;;  %v790_v49 = vunpack.i.l.bf16 %v789_v47 }
 0x108   :  { %769 = vmatprep.subr.msk.mxu0 %vm98_vm5, %v268_v42 }
 0x109   :  { %v353_v50 = vpop.permute.xlu0 %352  ;;  %v381_v56 = vsel %vm74_vm2, %v790_v49, %v791_v48  ;;  %v385_v0 = vmul.f32 0.0, %v790_v49 }
 0x10a   :  { %v794_v52 = vpop.permute.xlu1 %793 }
 0x10b   :  { %v796_v58 = vunpack.i.h.bf16 %v794_v52  ;;  %v795_v59 = vunpack.i.l.bf16 %v794_v52 }
 0x10d   :  { %v369_v63 = vsel %vm54_vm3, %v795_v59, %v796_v58  ;;  %v373_v4 = vmul.f32 0.0, %v795_v59 }
 0x10e   :  { %763 = vmatmul.mubr.msk.f32.vlgmr.msra.gmra.mrb[0].mxu0 %vm94_vm6, %v760_v46 }
 0x10f   :  { %770 = vmatpush1.msk.msra.mxu0 %vm98_vm5, %v857_v3  ;;  %734 = vmatprep.mubr.f32.mxu0 %v799_v2 }
 0x112   :  { %771 = vmatmul.mubr.msk.f32.vlgmr.msra.gmra.mrb[2].mxu0 %vm94_vm6, %v653_v6 }
 0x1e1   :  { %v342_v51 = vpop.f32.mrb[0].mxu0 }
 0x1e2   :  { %v355_v53 = vadd.f32 %v353_v50, %v342_v51  ;;  %v344_v54 = vpop.f32.mrb[1].mxu0 }
 0x1e3   :  { %v356_v55 = vadd.f32 %v353_v50, %v344_v54 }
 0x1e4   :  { %v357_v57 = vmax.f32 %v355_v53, 0.0 }
 0x1e5   :  { %v358_v60 = vmax.f32 %v356_v55, 0.0  ;;  %v736_v21 = vpop.f32.mrb[2].mxu0 }
 0x1e6   :  { %v386_v61 = vmul.f32 %v381_v56, %v357_v57  ;;  %v374_v1 = vmul.f32 %v369_v63, %v357_v57  ;;  %v738_v22 = vpop.f32.mrb[3].mxu0 }
 0x1e7   :  { %v387_v62 = vmul.f32 %v791_v48, %v358_v60  ;;  %v375_v3 = vmul.f32 %v796_v58, %v358_v60 }
 0x1e8   :  { %395 = vrot.lane.b32.xlu0 %v386_v61, %s802_s9 }
 0x1e9   :  { %397 = vrot.lane.b32.xlu1 %v387_v62, %s802_s9 }
 0x1ec   :  { %393 = vrot.lane.b32.xlu0 %v385_v0, %s802_s9 }
 0x1ed   :  { %483 = vrot.lane.b32.xlu1 %v374_v1, %s803_s10 }
 0x1f0   :  { %485 = vrot.lane.b32.xlu0 %v375_v3, %s803_s10 }
 0x1f1   :  { %481 = vrot.lane.b32.xlu1 %v373_v4, %s803_s10 }
 0x1f4   :  { %646 = vperm.xlu0 %786, %v643_v5  }
 0x1f5   :  { %658 = vperm.xlu1 %797, %v655_v7  }
 0x25a   :  { %v396_v8 = vpop.permute.xlu0 %395 }
 0x25b   :  { %v398_v9 = vpop.permute.xlu1 %397 }
 0x25c   :  { %v400_v10 = vsel %vm91_vm4, %v396_v8, %v398_v9 }
 0x25d   :  { %407 = vmatprep.subr.mxu1 %v400_v10 }
 0x25e   :  { %v394_v11 = vpop.permute.xlu0 %393 }
 0x25f   :  { %v484_v13 = vpop.permute.xlu1 %483  ;;  %v399_v14 = vsel %vm91_vm4, %v394_v11, %v396_v8 }
 0x260   :  { %408 = vmatpush1.msra.mxu1 %v399_v14 }
 0x261   :  { %765 = vmatmul.mubr.msk.f32.vlgmr.msra.gmra.mrb[0].mxu1 %vm403_vm8, %v764_v12 }
 0x262   :  { %v486_v15 = vpop.permute.xlu0 %485  ;;  %558 = vmatprep.mubr.f32.mxu1 %v799_v2 }
 0x263   :  { %v482_v16 = vpop.permute.xlu1 %481  ;;  %v488_v17 = vsel %vm183_vm7, %v484_v13, %v486_v15 }
 0x264   :  { %v487_v18 = vsel %vm183_vm7, %v482_v16, %v484_v13  ;;  %494 = vmatprep.subr.mxu1 %v488_v17 }
 0x265   :  { %495 = vmatpush1.msra.mxu1 %v487_v18 }
 0x266   :  { %570 = vmatprep.subr.mxu1 %v358_v60 }
 0x269   :  { %766 = vmatmul.mubr.msk.f32.vlgmr.msra.gmra.mrb[0].mxu1 %vm403_vm8, %v376_v19 }
 0x26a   :  { %571 = vmatpush1.msra.mxu1 %v357_v57  ;;  %634 = vmatprep.mubr.f32.mxu1 %v799_v2 }
 0x271   :  { %768 = vmatmul.mubr.msk.f32.vlgmr.msra.gmra.mrb[0].mxu1 %vm403_vm8, %v767_v20 }
 0x273   :  { %v647_v24 = vpop.permute.xlu0 %646 }
 0x274   :  { %v659_v23 = vpop.permute.xlu1 %658 }
 0x275   :  { %v737_v28 = vadd.f32 %v736_v21, %v659_v23  ;;  %v739_v30 = vadd.f32 %v738_v22, %v659_v23 }
 0x344   :  { %v636_v25 = vpop.f32.mrb[0].mxu1 }
 0x345   :  { %v649_v26 = vadd.f32 %v647_v24, %v636_v25  ;;  %v638_v27 = vpop.f32.mrb[1].mxu1 }
 0x346   :  { %v650_v29 = vadd.f32 %v647_v24, %v638_v27 }
 0x347   :  { %v651_v31 = vmax.f32 %v649_v26, 0.0 }
 0x348   :  { %v652_v32 = vmax.f32 %v650_v29, 0.0 }
 0x349   :  { %v741_v33 = vadd.f32 %v737_v28, %v651_v31 }
 0x34a   :  { %v742_v2 = vadd.f32 %v739_v30, %v652_v32 }
 0x34b   :  { %v743_v34 = vmax.f32 %v741_v33, 0.0 }
 0x34c   :  { %v744_v35 = vmax.f32 %v742_v2, 0.0 }
 0x34d   :  { %745 = vst [vmem:[%s960_s8] sm:$0xff] %v743_v34 }
 0x34e   :  { %746 = vst [vmem:[%s960_s8 + $0x8] sm:$0xff] %v744_v35 }

</bundles_post_ra>
